<compile_context>
chip_gen: v7x
topology: tpu7x:2x2x1
jax: 0.10.0
libtpu: 0.0.40
codegen_flags: <defaults>
</compile_context>

<pallas_src>
import functools

import jax
import jax.numpy as jnp
from jax.experimental import pallas as pl
from jax.experimental.pallas import tpu as pltpu

_MIB = 1024 * 1024
_MAX_TILE_B = 256          # max output rows per grid step
_MAX_INFLIGHT_ROWS = 8     # concurrent row DMAs in the manual-gather path


def _round_up(x, m):
    return (x + m - 1) // m * m


def _cdiv(a, b):
    return (a + b - 1) // b


# ---------------------------------------------------------------------------
# Per-generation configuration (VMEM budget, one-hot width cutoff).
# ---------------------------------------------------------------------------
@functools.lru_cache(maxsize=None)
def _tpu_config():
    """Returns (vmem_limit_bytes, max_onehot_users), derived per TPU generation."""
    vmem_cap = 64 * _MIB  # conservative default (v7x per-TensorCore VMEM)
    try:
        vmem_cap = int(pltpu.get_tpu_info().vmem_capacity_bytes)
    except Exception:
        pass
    try:
        kind = jax.devices()[0].device_kind.lower()
    except Exception:
        kind = ""
    # Scoped VMEM limit: 3/4 of physical, leaving >= 16 MiB headroom.
    # v5e/v6e (128 MiB) -> 96 MiB; v7x (64 MiB/TC) -> 48 MiB.
    vmem_limit = max(32 * _MIB, min(vmem_cap * 3 // 4, vmem_cap - 16 * _MIB))
    # One-hot contraction width cutoff: v5e's MXU is ~4.7x weaker than v6e/v7x,
    # so keep the one-hot matmul narrow there.
    # TODO(synk): on v5e a VMEM-resident per-row copy loop (O(TB*D)) would beat
    # the one-hot matmul (O(TB*U*D)) for U beyond ~1K; not implemented here.
    if "v5 lite" in kind or "v5e" in kind or "v5lite" in kind:
        max_onehot_users = 1024
    else:
        max_onehot_users = 4096
    return vmem_limit, max_onehot_users


def _pick_tile_b(b, d_pad, itemsize, vmem_limit):
    """Output rows per grid step: multiple of 8, <= 256, VMEM-bounded, balanced."""
    # The double-buffered output tile should use at most ~1/4 of the scoped limit.
    out_budget = max(_MIB, vmem_limit // 4)
    cap = max(8, (out_budget // (2 * d_pad * itemsize)) // 8 * 8)
    cap = min(_MAX_TILE_B, cap)
    # Balance tile size across tiles so a batch just over a tile boundary doesn't
    # run an almost-all-padding tile.
    n_tiles = _cdiv(b, cap)
    return max(8, _round_up(_cdiv(b, n_tiles), 8))


def _fast_path_fits(num_users, d_pad, itemsize, tile_b, vmem_limit):
    """Explicit per-TensorCore VMEM accounting for the resident-table fast path."""
    table_bytes = num_users * d_pad * itemsize
    # TODO(synk): pipeline_mode=pl.Buffered(1) on the table BlockSpec would make
    # the constant-index table block single-buffered; until then budget 2x.
    resident = 2 * table_bytes
    out_bufs = 2 * tile_b * d_pad * itemsize          # double-buffered output tile
    idx_bufs = 2 * tile_b * 128 * 4                   # (TB,1) int32 padded to a lane tile
    onehot = tile_b * _round_up(num_users, 128) * 4   # (TB,U) one-hot temporary
    acc = tile_b * d_pad * 4                          # f32 matmul result
    slack = 4 * _MIB
    return resident + out_bufs + idx_bufs + onehot + acc + slack <= vmem_limit


# ---------------------------------------------------------------------------
# Fast path: VMEM-resident table + batched one-hot MXU gather.
# ---------------------------------------------------------------------------
def _onehot_gather_kernel(idx_ref, table_ref, out_ref):
    # idx_ref:   (TB, 1)  int32  -- user ids for this output tile
    # table_ref: (U,  Dp) float  -- whole embedding table, VMEM resident
    # out_ref:   (TB, Dp) float
    idx = idx_ref[...]                                            # (TB, 1)
    n_users = table_ref.shape[0]
    # (1, U) iota; the compare broadcasts it -- no (TB, U) iota materialized.
    col = jax.lax.broadcasted_iota(jnp.int32, (1, n_users), 1)
    # One-hot in the table's dtype: if the table is bf16 this stays on the native
    # bf16 MXU path (exact, since weights are 0/1 and accumulation is f32).
    onehot = (idx == col).astype(table_ref.dtype)                 # (TB, U)
    out_ref[...] = jnp.dot(
        onehot, table_ref[...], preferred_element_type=jnp.float32
    ).astype(out_ref.dtype)


def _gather_resident_table(table, flat_idx, *, tile_b, b_pad, vmem_limit):
    num_users, d_pad = table.shape
    b = flat_idx.shape[0]
    itemsize = jnp.dtype(table.dtype).itemsize
    idx2d = jnp.pad(flat_idx, (0, b_pad - b)).reshape(b_pad, 1)
    n_tiles = b_pad // tile_b

    cost = pl.CostEstimate(
        flops=2 * b_pad * num_users * d_pad,
        transcendentals=0,
        bytes_accessed=(num_users * d_pad + b_pad * d_pad) * itemsize + b_pad * 4,
    )

    return pl.pallas_call(
        _onehot_gather_kernel,
        out_shape=jax.ShapeDtypeStruct((b_pad, d_pad), table.dtype),
        grid_spec=pltpu.PrefetchScalarGridSpec(
            num_scalar_prefetch=0,
            grid=(n_tiles,),
            in_specs=[
                # user ids for this tile
                pl.BlockSpec((tile_b, 1), lambda i: (i, 0)),
                # whole table, same block every step -> DMA'd once, VMEM resident
                pl.BlockSpec((num_users, d_pad), lambda i: (0, 0)),
            ],
            out_specs=pl.BlockSpec((tile_b, d_pad), lambda i: (i, 0)),
        ),
        compiler_params=pltpu.CompilerParams(
            # rows are independent -> shard the batch axis across v7x's 2 TCs
            dimension_semantics=("parallel",),
            vmem_limit_bytes=vmem_limit,
        ),
        cost_estimate=cost,
    )(idx2d, table)


# ---------------------------------------------------------------------------
# Large-table path: manual multi-buffered DMA row gather from HBM.
# ---------------------------------------------------------------------------
def _make_manual_gather_kernel(tile_b, n_inflight):
    def kernel(idx_ref, table_ref, out_ref, stage_ref, sems):
        # idx_ref:   (b_pad,)      int32 in SMEM (scalar prefetch)
        # table_ref: (U, Dp)       table left in HBM (memory_space=pl.ANY)
        # out_ref:   (TB, Dp)      VMEM output tile
        # stage_ref: (TB, Dp)      VMEM staging slab
        # sems:      (n_inflight,) DMA semaphores (ring)
        base = pl.program_id(0) * tile_b

        def row_copy(r):
            uid = idx_ref[base + r]
            return pltpu.make_async_copy(
                table_ref.at[pl.ds(uid, 1), :],
                stage_ref.at[pl.ds(r, 1), :],
                sems.at[r % n_inflight],
            )

        # Prime the ring: first n_inflight row fetches in flight
        # (static Python loop -> fully visible to the scheduler).
        for r in range(n_inflight):
            row_copy(r).start()

        # Steady state: retire row r, immediately issue row r + n_inflight.
        @pl.loop(0, tile_b)
        def _(r):
            row_copy(r).wait()

            @pl.when(r + n_inflight < tile_b)
            def _():
                row_copy(r + n_inflight).start()

        # Single dense, lane-aligned store of the whole slab.
        out_ref[...] = stage_ref[...]

    return kernel


def _gather_manual_dma(table, flat_idx, *, tile_b, b_pad, vmem_limit):
    num_users, d_pad = table.shape
    b = flat_idx.shape[0]
    idx_padded = jnp.pad(flat_idx, (0, b_pad - b))     # pad ids -> row 0 (sliced off)
    n_tiles = b_pad // tile_b
    n_inflight = min(_MAX_INFLIGHT_ROWS, tile_b)
    kernel = _make_manual_gather_kernel(tile_b, n_inflight)

    return pl.pallas_call(
        kernel,
        out_shape=jax.ShapeDtypeStruct((b_pad, d_pad), table.dtype),
        grid_spec=pltpu.PrefetchScalarGridSpec(
            num_scalar_prefetch=1,
            grid=(n_tiles,),
            in_specs=[pl.BlockSpec(memory_space=pl.ANY)],   # table stays in HBM
            out_specs=pl.BlockSpec((tile_b, d_pad), lambda i, idx: (i, 0)),
            scratch_shapes=[
                pltpu.VMEM((tile_b, d_pad), table.dtype),
                pltpu.SemaphoreType.DMA((n_inflight,)),
            ],
        ),
        compiler_params=pltpu.CompilerParams(
            # output slabs are independent -> shard across v7x's 2 TCs
            dimension_semantics=("parallel",),
            vmem_limit_bytes=vmem_limit,
        ),
    )(idx_padded, table)


# ---------------------------------------------------------------------------
# Public wrapper (== FullUserEmbedding.forward)
# ---------------------------------------------------------------------------
@functools.partial(jax.jit, static_argnames=("force_manual",))
def full_user_embedding_forward(embedding, indices, *, force_manual=False):
    """Pallas equivalent of FullUserEmbedding.forward: embedding[indices].

    embedding: (num_users, D) float table.
    indices:   integer array of any shape.
    returns:   indices.shape + (D,) array with embedding's dtype.
    """
    num_users, d = embedding.shape
    itemsize = jnp.dtype(embedding.dtype).itemsize
    indices = jnp.asarray(indices)
    orig_shape = indices.shape

    flat_idx = indices.reshape(-1).astype(jnp.int32)
    b = int(flat_idx.shape[0])
    if b == 0:
        return jnp.zeros(orig_shape + (d,), embedding.dtype)

    # torch-style negative-id wrap, then clamp so a bad id can never become an
    # out-of-bounds DMA.  NOTE: unlike torch, out-of-range ids are silently
    # clamped instead of raising IndexError.
    flat_idx = jnp.where(flat_idx < 0, flat_idx + num_users, flat_idx)
    flat_idx = jnp.clip(flat_idx, 0, num_users - 1)

    # Lane-dense last dim: pad D up to a multiple of 128 (pad once, slice output).
    d_pad = _round_up(d, 128)
    table = embedding if d_pad == d else jnp.pad(embedding, ((0, 0), (0, d_pad - d)))

    vmem_limit, max_onehot_users = _tpu_config()
    tile_b = _pick_tile_b(b, d_pad, itemsize, vmem_limit)
    b_pad = _cdiv(b, tile_b) * tile_b

    use_resident = (
        not force_manual
        and num_users <= max_onehot_users
        and _fast_path_fits(num_users, d_pad, itemsize, tile_b, vmem_limit)
    )

    if use_resident:
        out = _gather_resident_table(
            table, flat_idx, tile_b=tile_b, b_pad=b_pad, vmem_limit=vmem_limit)
    else:
        out = _gather_manual_dma(
            table, flat_idx, tile_b=tile_b, b_pad=b_pad, vmem_limit=vmem_limit)

    out = out[:b, :d]
    return out.reshape(orig_shape + (d,))


def init_full_user_embedding(key, num_users, num_latent_factors):
    """kaiming_uniform_ with PyTorch defaults (a=0, fan_in, leaky_relu):
    bound = sqrt(6 / fan_in), fan_in = num_latent_factors."""
    bound = float(jnp.sqrt(6.0 / num_latent_factors))
    return jax.random.uniform(
        key, (num_users, num_latent_factors),
        minval=-bound, maxval=bound, dtype=jnp.float32,
    )


if __name__ == "__main__":
    num_users = 64
    num_latent_factors = 128  # lane-dense last dim
    batch = 8

    key = jax.random.PRNGKey(0)
    k_emb, k_idx1, k_idx2 = jax.random.split(key, 3)

    embedding = init_full_user_embedding(k_emb, num_users, num_latent_factors)

    # 1-D batch of user ids (fast path: VMEM-resident table + one-hot MXU gather).
    user_ids = jax.random.randint(k_idx1, (batch,), 0, num_users, dtype=jnp.int32)
    ref = embedding[user_ids]
    out = jax.block_until_ready(full_user_embedding_forward(embedding, user_ids))
    assert out.shape == (batch, num_latent_factors)
    assert jnp.allclose(out, ref), "fast-path mismatch vs reference (1-D ids)"

    # 2-D index array (exercises tile padding + output reshape).
    user_ids2 = jax.random.randint(k_idx2, (2, 3), 0, num_users, dtype=jnp.int32)
    out2 = jax.block_until_ready(full_user_embedding_forward(embedding, user_ids2))
    ref2 = embedding[user_ids2]
    assert out2.shape == (2, 3, num_latent_factors)
    assert jnp.allclose(out2, ref2), "fast-path mismatch vs reference (2-D ids)"

    # Negative ids (torch wrap semantics).
    ids_neg = jnp.array([-1, 3, -num_users], dtype=jnp.int32)
    ref_neg = embedding[jnp.array([num_users - 1, 3, 0])]
    out_neg = jax.block_until_ready(full_user_embedding_forward(embedding, ids_neg))
    assert jnp.allclose(out_neg, ref_neg), "negative-id mismatch"

    # Non-multiple-of-128 latent dim (exercises the lane-padding path).
    emb_odd = init_full_user_embedding(k_emb, num_users, 72)
    out_odd = jax.block_until_ready(full_user_embedding_forward(emb_odd, user_ids))
    assert out_odd.shape == (batch, 72)
    assert jnp.allclose(out_odd, emb_odd[user_ids]), "padded-D mismatch"

    # Force the large-table manual-DMA gather path on the same small inputs.
    out_manual = jax.block_until_ready(
        full_user_embedding_forward(embedding, user_ids, force_manual=True))
    assert jnp.allclose(out_manual, ref), "manual-DMA path mismatch"

    print("KERNEL_OK")
</pallas_src>

<mosaic_0001>
module attributes {stable_mosaic.version = 11 : i64} {
  func.func @_onehot_gather_kernel(%arg0: i32, %arg1: memref<8x1xi32, #tpu.memory_space<vmem>>, %arg2: memref<64x128xf32, #tpu.memory_space<vmem>>, %arg3: memref<8x128xf32, #tpu.memory_space<vmem>>) attributes {dimension_semantics = [#tpu.dimension_semantics<parallel>], iteration_bounds = array<i64: 1>, scalar_prefetch = 0 : i64, scratch_operands = 0 : i64, tpu.core_type = #tpu.core_type<tc>, window_params = [{transform_indices = @transform_0, window_bounds = array<i64: 8, 1>}, {pipeline_mode = #tpu.pipeline_mode<synchronous>, transform_indices = @transform_1, window_bounds = array<i64: 64, 128>}, {transform_indices = @transform_2, window_bounds = array<i64: 8, 128>}]} {
    %c0 = arith.constant 0 : index
    %c0_0 = arith.constant 0 : index
    %0 = vector.load %arg1[%c0, %c0_0] : memref<8x1xi32, #tpu.memory_space<vmem>>, vector<8x1xi32>
    %1 = tpu.iota {dimensions = array<i32: 1>} : vector<1x64xi32>
    %2 = vector.broadcast %0 : vector<8x1xi32> to vector<8x64xi32>
    %3 = vector.broadcast %1 : vector<1x64xi32> to vector<8x64xi32>
    %4 = arith.cmpi eq, %2, %3 : vector<8x64xi32>
    %5 = arith.extui %4 : vector<8x64xi1> to vector<8x64xi32>
    %6 = arith.sitofp %5 : vector<8x64xi32> to vector<8x64xf32>
    %c0_1 = arith.constant 0 : index
    %c0_2 = arith.constant 0 : index
    %7 = vector.load %arg2[%c0_1, %c0_2] : memref<64x128xf32, #tpu.memory_space<vmem>>, vector<64x128xf32>
    %cst = arith.constant dense<0.000000e+00> : vector<8x128xf32>
    %8 = tpu.matmul %6, %7, %cst {dimension_numbers = #tpu.dot_dimension_numbers<[1], [0], [0], [1], [0, 0, 1, 1], [], []>} : vector<8x64xf32>, vector<64x128xf32>, vector<8x128xf32> -> vector<8x128xf32>
    %c0_3 = arith.constant 0 : index
    %c0_4 = arith.constant 0 : index
    %9 = vector.load %arg3[%c0_3, %c0_4] : memref<8x128xf32, #tpu.memory_space<vmem>>, vector<8x128xf32>
    tpu.vector_store %arg3[%c0_3, %c0_4], %8 {strides = array<i32>} : memref<8x128xf32, #tpu.memory_space<vmem>>, vector<8x128xf32>,
    return
  }
  func.func @transform_0(%arg0: i32) -> (i32, i32) {
    %c0_i32 = arith.constant 0 : i32
    %c0_i32_0 = arith.constant 0 : i32
    return %arg0, %c0_i32 : i32, i32
  }
  func.func @transform_1(%arg0: i32) -> (i32, i32) {
    %c0_i32 = arith.constant 0 : i32
    %c0_i32_0 = arith.constant 0 : i32
    %c0_i32_1 = arith.constant 0 : i32
    return %c0_i32, %c0_i32_0 : i32, i32
  }
  func.func @transform_2(%arg0: i32) -> (i32, i32) {
    %c0_i32 = arith.constant 0 : i32
    %c0_i32_0 = arith.constant 0 : i32
    return %arg0, %c0_i32 : i32, i32
  }
}

</mosaic_0001>

<bundles_post_ra>
// kernel: full_user_embedding_forward.1
= control target key start
LH: loop header
LB: loop body
LE: loop exit
PB: predicated region body
PF: predicated region fallthrough
CT: control target
= control target key end

     0   :  { %7 = vsyncpa [#allocation3], 0  ;;  %s282_s0 = inlined_call_operand.vmem [shape: s32[8,1], index: 0, kind: input, shape index: {}]   ;;  %s283_s1 = inlined_call_operand.hbm [shape: f32[64,128], index: 1, kind: input, shape index: {}]   ;;  %s284_s2 = inlined_call_operand.hbm [shape: f32[8,128], index: 2, kind: output, shape index: {}]  }
   0x1   :  { %8 = vsyncpa [#allocation4], 0  ;;  %s232_s9 = smov [#allocation2]   ;;  %s184_s13 = scalar_lea.hbm %s283_s1, 1024 }
   0x2   :  { %s16_s10 = sshll.u32 %s232_s9, 4  ;;  %p185_p0 = scmp.ne.s32.totalorder %s283_s1, %s184_s13  ;;  %s17_s10 = int_to_ptr.vmem [resolvable:$true] %s16_s10 }
   0x3   :  { %p188_p1 = scmp.lt.u32.totalorder %s184_s13, %s283_s1 }
   0x5   :  { %p190_p2 = pnand %p188_p1, %p185_p0 }
   0x7   :  { %193 = shalt.err (!%p190_p2)
}
   0x8   :  { %s194_s18 = scalar_lea.vmem %s17_s10, 1024  ;;  %p199_p4 = scmp.lt.s32.totalorder %s17_s10, %s17_s10 }
   0x9   :  { %p195_p3 = scmp.ne.s32.totalorder %s17_s10, %s194_s18  ;;  %p200_p5 = scmp.lt.s32.totalorder %s194_s18, %s194_s18 }
   0xb   :  { %p201_p6 = por %p200_p5, %p199_p4 }
   0xd   :  { %p202_p7 = pnand %p201_p6, %p195_p3 }
   0xf   :  { %205 = shalt.err (!%p202_p7)
}
  0x10   :  { %s233_s19 = smov 128   ;;  %s234_s20 = smov 8  }
  0x11   :  { %22 = dma.hbm_to_vmem [thread:$0]  %s283_s1, 1024, %s17_s10, [#allocation3], %s233_s19, %s233_s19, %s234_s20  }
  0x12   :  { %228 = dma.done.wait [#allocation3], 1024  }
  0x13   :  { %229 = vsyncadd [#allocation3], 4294966272  ;;  %v235_v0 = vmov 0   ;;  %v236_v1 = vmov 0.0|0.0   ;;  %v26_v2 = vld [vmem:[%s282_s0] sm:$0xff]  ;;  %v36_v4 = vld [vmem:[#allocation2 + $0x8] sm:$0xff]  ;;  %v27_v16 = vlaneseq }
  0x14   :  { %183 = vset.pattern.permute.xlu0 %v235_v0  ;;  %163 = vmatprep.subr.bf16.mxu0 %v236_v1  ;;  %v35_v3 = vld [vmem:[#allocation2] sm:$0xff]  ;;  %v37_v6 = vld [vmem:[#allocation2 + $0x10] sm:$0xff]  ;;  %v38_v7 = vld [vmem:[#allocation2 + $0x18] sm:$0xff]  ;;  %vm237_vm0 = vmmov 0   ;;  %v238_v8 = vmov 0.0   ;;  %vm43_vm1 = vcmask 523264  }
  0x15   :  { %30 = vperm.xlu0 %183, %v26_v2   ;;  %v164_v5 = vpack.c.bf16 %v36_v4, %v35_v3  ;;  %160 = vmatprep.mubr.msk.f32.mxu0 %vm237_vm0, %v238_v8  ;;  %v167_v9 = vpack.c.bf16 %v38_v7, %v37_v6  ;;  %v39_v10 = vld [vmem:[#allocation2 + $0x20] sm:$0xff]  ;;  %v40_v11 = vld [vmem:[#allocation2 + $0x28] sm:$0xff]  ;;  %v41_v13 = vld [vmem:[#allocation2 + $0x30] sm:$0xff]  ;;  %v28_v17 = vand.u32 127, %v27_v16  ;;  %s239_s0 = smov [#allocation5]  }
  0x16   :  { %v170_v12 = vpack.c.bf16 %v40_v11, %v39_v10  ;;  %v42_v14 = vld [vmem:[#allocation2 + $0x38] sm:$0xff]  ;;  %s124_s1 = sshll.u32 %s239_s0, 4  ;;  %s125_s1 = int_to_ptr.vmem [resolvable:$true] %s124_s1 }
  0x17   :  { %165 = vmatpush3.bf16.msra.mxu0 %v164_v5  ;;  %v173_v15 = vpack.c.bf16 %v42_v14, %v41_v13  ;;  %s206_s25 = scalar_lea.vmem %s125_s1, 128  ;;  %p211_p9 = scmp.lt.s32.totalorder %s125_s1, %s125_s1 }
  0x18   :  { %166 = vmatprep.subr.bf16.mxu0 %v236_v1  ;;  %p207_p8 = scmp.ne.s32.totalorder %s125_s1, %s206_s25  ;;  %p212_p10 = scmp.lt.s32.totalorder %s206_s25, %s206_s25 }
  0x1a   :  { %p213_p11 = por %p212_p10, %p211_p9 }
  0x1b   :  { %168 = vmatpush3.bf16.msra.mxu0 %v167_v9 }
  0x1c   :  { %169 = vmatprep.subr.bf16.mxu0 %v236_v1  ;;  %p214_p12 = pnand %p213_p11, %p207_p8 }
  0x1f   :  { %171 = vmatpush3.bf16.msra.mxu0 %v170_v12 }
  0x20   :  { %172 = vmatprep.subr.bf16.mxu0 %v236_v1 }
  0x23   :  { %174 = vmatpush3.bf16.msra.mxu0 %v173_v15 }
  0x94   :  { %v31_v18 = vpop.permute.xlu0 %30 }
  0x95   :  { %vm32_vm2 = vcmp.eq.s32.totalorder %v31_v18, %v28_v17 }
  0x96   :  { %v133_v19 = vsel %vm32_vm2, 1.0, %v238_v8 }
  0x97   :  { %161 = vmatmul.mubr.msk.f32.vlgmr.msra.gmra.mrb[0].mxu0 %vm43_vm1, %v133_v19 }
 0x16a   :  { %v113_v20 = vpop.f32.mrb[0].mxu0 }
 0x16b   :  { %117 = vst [vmem:[#allocation5] sm:$0xff] %v113_v20  ;;  %v162_v21 = vpop.f32.mrb[1].mxu0 }
 0x16c   :  { %217 = shalt.err (!%p214_p12)
}
 0x16d   :  { %s218_s28 = scalar_lea.hbm %s284_s2, 128 }
 0x16e   :  { %p219_p13 = scmp.ne.s32.totalorder %s284_s2, %s218_s28  ;;  %p222_p0 = scmp.lt.u32.totalorder %s218_s28, %s284_s2 }
 0x170   :  { %p224_p1 = pnand %p222_p0, %p219_p13 }
 0x172   :  { %227 = shalt.err (!%p224_p1)
}
 0x173   :  { %127 = dma.vmem_to_hbm [thread:$0]  %s125_s1, 128, %s284_s2, [#allocation4]  }
 0x174   :  { %230 = dma.done.wait [#allocation4], 128  }
 0x175   :  { %231 = vsyncadd [#allocation4], 4294967168 }
 0x176   :  { %131 = vsyncpa [#allocation3], 1 }
 0x177   :  { %132 = vsyncpa [#allocation4], 1 }

</bundles_post_ra>
